<compile_context>
chip_gen: v7x
topology: tpu7x:2x2x1
jax: 0.10.0
libtpu: 0.0.40
codegen_flags: <defaults>
</compile_context>

<pallas_src>
import jax
import jax.numpy as jnp
from jax.experimental import pallas as pl
from jax.experimental.pallas import tpu as pltpu

INPUT_DIM = 12
HIDDEN_DIM = 10
OUTPUT_DIM = 1

# Packed-parameter column layout: [W1 | b1 | w2 | b2]
_COL_B1 = INPUT_DIM
_COL_W2 = INPUT_DIM + 1
_COL_B2 = INPUT_DIM + 2
_P_COLS = INPUT_DIM + 3


def _round_up(x, m):
    return (x + m - 1) // m * m


def mlp_kernel(xt_ref, p_ref, o_ref):
    """xt_ref: [INPUT_DIM, TILE_B] (batch on lanes).
    p_ref:  [HIDDEN_DIM, INPUT_DIM + 3] packed params.
    o_ref:  [OUTPUT_DIM, TILE_B] (lane-dense output)."""
    w1 = p_ref[:, :INPUT_DIM]              # [H, IN]   (PyTorch [out, in] layout as-is)
    b1 = p_ref[:, _COL_B1:_COL_B1 + 1]     # [H, 1]    broadcasts over lanes (batch)
    w2 = p_ref[:, _COL_W2:_COL_W2 + 1]     # [H, 1]    second-layer weight row as a column
    b2 = p_ref[0:1, _COL_B2:_COL_B2 + 1]   # [1, 1]

    # hidden = tanh(W1 @ x^T + b1)  -> [H, TILE_B]   (MXU, f32 accumulate; tanh on EUP)
    h = jnp.dot(w1, xt_ref[...], preferred_element_type=jnp.float32)
    h = jnp.tanh(h + b1)

    # output = W2 @ hidden + b2 as a VPU multiply + sublane reduce (no MXU round-trip)
    o = jnp.sum(h * w2, axis=0, keepdims=True) + b2    # [1, TILE_B]
    o_ref[...] = o


def pack_params(w1, b1, w2, b2):
    """w1: [HIDDEN, INPUT]; b1: [HIDDEN]; w2: [OUTPUT, HIDDEN]; b2: [OUTPUT] (PyTorch layout)."""
    p = jnp.zeros((HIDDEN_DIM, _P_COLS), jnp.float32)
    p = p.at[:, :INPUT_DIM].set(w1.astype(jnp.float32))
    p = p.at[:, _COL_B1].set(b1.astype(jnp.float32))
    p = p.at[:, _COL_W2].set(w2[0].astype(jnp.float32))
    p = p.at[0, _COL_B2].set(b2[0].astype(jnp.float32))
    return p


def mlp_forward(x, w1, b1, w2, b2, *, tile_b=512):
    """Forward pass of the PyTorch Model.

    x:  [B, INPUT_DIM] float32
    w1: [HIDDEN_DIM, INPUT_DIM], b1: [HIDDEN_DIM]
    w2: [OUTPUT_DIM, HIDDEN_DIM], b2: [OUTPUT_DIM]
    returns [B, OUTPUT_DIM] float32
    """
    B = x.shape[0]
    params = pack_params(w1, b1, w2, b2)

    # Lane-dense layout: batch on the lane axis, padded to a multiple of 128.
    # Keep tiles modest (<= tile_b lanes) so double-buffered x/output blocks fit
    # comfortably in v7x's smaller VMEM while large batches still pipeline.
    tb = min(tile_b, _round_up(B, 128))
    b_pad = _round_up(B, tb)
    xt = jnp.zeros((INPUT_DIM, b_pad), jnp.float32).at[:, :B].set(x.T.astype(jnp.float32))

    out_t = pl.pallas_call(
        mlp_kernel,
        out_shape=jax.ShapeDtypeStruct((OUTPUT_DIM, b_pad), jnp.float32),
        grid=(b_pad // tb,),
        in_specs=[
            # batch-tiled activations (batch on lanes)
            pl.BlockSpec((INPUT_DIM, tb), lambda i: (0, i)),
            # packed params: constant index_map -> resident, DMA'd once
            pl.BlockSpec((HIDDEN_DIM, _P_COLS), lambda i: (0, 0)),
        ],
        out_specs=pl.BlockSpec((OUTPUT_DIM, tb), lambda i: (0, i)),
        compiler_params=pltpu.CompilerParams(
            dimension_semantics=("parallel",),  # shard batch tiles across TCs (v7x megacore)
        ),
    )(xt, params)

    # Un-pad and return in the PyTorch [B, OUTPUT_DIM] convention.
    return out_t[:, :B].T


def init_params(key):
    """Deterministic init mimicking nn.Linear's U(-1/sqrt(fan_in), 1/sqrt(fan_in)),
    stored in PyTorch layout ([out, in] weights)."""
    k1, k2, k3, k4 = jax.random.split(key, 4)
    bound1 = 1.0 / jnp.sqrt(INPUT_DIM)
    bound2 = 1.0 / jnp.sqrt(HIDDEN_DIM)
    w1 = jax.random.uniform(k1, (HIDDEN_DIM, INPUT_DIM), jnp.float32, -bound1, bound1)
    b1 = jax.random.uniform(k2, (HIDDEN_DIM,), jnp.float32, -bound1, bound1)
    w2 = jax.random.uniform(k3, (OUTPUT_DIM, HIDDEN_DIM), jnp.float32, -bound2, bound2)
    b2 = jax.random.uniform(k4, (OUTPUT_DIM,), jnp.float32, -bound2, bound2)
    return w1, b1, w2, b2


if __name__ == "__main__":
    key = jax.random.PRNGKey(0)
    k_x, k_p = jax.random.split(key)

    B = 8
    x = jax.random.normal(k_x, (B, INPUT_DIM), jnp.float32)
    w1, b1, w2, b2 = init_params(k_p)

    out = mlp_forward(x, w1, b1, w2, b2)
    out = jax.block_until_ready(out)

    # Reference check in plain JAX (same math as the PyTorch forward).
    ref = jnp.tanh(x @ w1.T + b1) @ w2.T + b2
    assert out.shape == (B, OUTPUT_DIM)
    assert jnp.allclose(out, ref, atol=1e-5, rtol=1e-5)

    # TODO(synk): nn.MSELoss / SGD optimizer in the module are training state,
    # not part of the forward pass, and are intentionally not implemented.
    print("KERNEL_OK")
</pallas_src>

<mosaic_0001>
module attributes {stable_mosaic.version = 11 : i64} {
  func.func @mlp_kernel(%arg0: i32, %arg1: memref<12x128xf32, #tpu.memory_space<vmem>>, %arg2: memref<10x15xf32, #tpu.memory_space<vmem>>, %arg3: memref<1x128xf32, #tpu.memory_space<vmem>>) attributes {dimension_semantics = [#tpu.dimension_semantics<parallel>], iteration_bounds = array<i64: 1>, scalar_prefetch = 0 : i64, scratch_operands = 0 : i64, tpu.core_type = #tpu.core_type<tc>, window_params = [{transform_indices = @transform_0, window_bounds = array<i64: 12, 128>}, {pipeline_mode = #tpu.pipeline_mode<synchronous>, transform_indices = @transform_1, window_bounds = array<i64: 10, 15>}, {transform_indices = @transform_2, window_bounds = array<i64: 1, 128>}]} {
    %c0 = arith.constant 0 : index
    %c0_0 = arith.constant 0 : index
    %0 = vector.load %arg2[%c0, %c0_0] : memref<10x15xf32, #tpu.memory_space<vmem>>, vector<10x12xf32>
    %c0_1 = arith.constant 0 : index
    %c12 = arith.constant 12 : index
    %1 = vector.load %arg2[%c0_1, %c12] : memref<10x15xf32, #tpu.memory_space<vmem>>, vector<10x1xf32>
    %c0_2 = arith.constant 0 : index
    %c13 = arith.constant 13 : index
    %2 = vector.load %arg2[%c0_2, %c13] : memref<10x15xf32, #tpu.memory_space<vmem>>, vector<10x1xf32>
    %c0_3 = arith.constant 0 : index
    %c14 = arith.constant 14 : index
    %3 = vector.load %arg2[%c0_3, %c14] : memref<10x15xf32, #tpu.memory_space<vmem>>, vector<1x1xf32>
    %c0_4 = arith.constant 0 : index
    %c0_5 = arith.constant 0 : index
    %4 = vector.load %arg1[%c0_4, %c0_5] : memref<12x128xf32, #tpu.memory_space<vmem>>, vector<12x128xf32>
    %cst = arith.constant dense<0.000000e+00> : vector<10x128xf32>
    %5 = tpu.matmul %0, %4, %cst {dimension_numbers = #tpu.dot_dimension_numbers<[1], [0], [0], [1], [0, 0, 1, 1], [], []>} : vector<10x12xf32>, vector<12x128xf32>, vector<10x128xf32> -> vector<10x128xf32>
    %6 = vector.broadcast %1 : vector<10x1xf32> to vector<10x128xf32>
    %7 = arith.addf %5, %6 : vector<10x128xf32>
    %8 = math.tanh %7 : vector<10x128xf32>
    %9 = vector.broadcast %2 : vector<10x1xf32> to vector<10x128xf32>
    %10 = arith.mulf %8, %9 : vector<10x128xf32>
    %cst_6 = arith.constant dense<0.000000e+00> : vector<128xf32>
    %11 = vector.multi_reduction <add>, %10, %cst_6 [0] : vector<10x128xf32> to vector<128xf32>
    %12 = vector.shape_cast %11 : vector<128xf32> to vector<1x128xf32>
    %13 = vector.broadcast %3 : vector<1x1xf32> to vector<1x128xf32>
    %14 = arith.addf %12, %13 : vector<1x128xf32>
    %c0_7 = arith.constant 0 : index
    %c0_8 = arith.constant 0 : index
    %15 = vector.load %arg3[%c0_7, %c0_8] : memref<1x128xf32, #tpu.memory_space<vmem>>, vector<1x128xf32>
    tpu.vector_store %arg3[%c0_7, %c0_8], %14 {strides = array<i32>} : memref<1x128xf32, #tpu.memory_space<vmem>>, vector<1x128xf32>,
    return
  }
  func.func @transform_0(%arg0: i32) -> (i32, i32) {
    %c0_i32 = arith.constant 0 : i32
    %c0_i32_0 = arith.constant 0 : i32
    return %c0_i32, %arg0 : i32, i32
  }
  func.func @transform_1(%arg0: i32) -> (i32, i32) {
    %c0_i32 = arith.constant 0 : i32
    %c0_i32_0 = arith.constant 0 : i32
    %c0_i32_1 = arith.constant 0 : i32
    return %c0_i32, %c0_i32_0 : i32, i32
  }
  func.func @transform_2(%arg0: i32) -> (i32, i32) {
    %c0_i32 = arith.constant 0 : i32
    %c0_i32_0 = arith.constant 0 : i32
    return %c0_i32, %arg0 : i32, i32
  }
}

</mosaic_0001>

<bundles_post_ra>
// kernel: tpu_custom_call.1
= control target key start
LH: loop header
LB: loop body
LE: loop exit
PB: predicated region body
PF: predicated region fallthrough
CT: control target
= control target key end

     0   :  { %7 = vsyncpa [#allocation3], 0  ;;  %s351_s0 = inlined_call_operand.hbm [shape: f32[12,128], index: 0, kind: input, shape index: {}]   ;;  %s352_s1 = inlined_call_operand.hbm [shape: f32[10,15], index: 1, kind: input, shape index: {}]   ;;  %s353_s2 = inlined_call_operand.hbm [shape: f32[1,128], index: 2, kind: output, shape index: {}]  }
   0x1   :  { %8 = vsyncpa [#allocation6], 0 }
   0x2   :  { %9 = vsyncpa [#allocation4], 0  ;;  %s291_s9 = smov [#allocation2]   ;;  %s219_s13 = scalar_lea.hbm %s351_s0, 256 }
   0x3   :  { %s15_s10 = sshll.u32 %s291_s9, 4  ;;  %p220_p0 = scmp.ne.s32.totalorder %s351_s0, %s219_s13  ;;  %s16_s10 = int_to_ptr.vmem [resolvable:$true] %s15_s10 }
   0x4   :  { %p223_p1 = scmp.lt.u32.totalorder %s219_s13, %s351_s0 }
   0x6   :  { %p225_p2 = pnand %p223_p1, %p220_p0 }
   0x8   :  { %228 = shalt.err (!%p225_p2)
}
   0x9   :  { %s229_s18 = scalar_lea.vmem %s16_s10, 256  ;;  %p234_p4 = scmp.lt.s32.totalorder %s16_s10, %s16_s10 }
   0xa   :  { %p230_p3 = scmp.ne.s32.totalorder %s16_s10, %s229_s18  ;;  %p235_p5 = scmp.lt.s32.totalorder %s229_s18, %s229_s18 }
   0xc   :  { %p236_p6 = por %p235_p5, %p234_p4 }
   0xe   :  { %p237_p7 = pnand %p236_p6, %p230_p3 }
  0x10   :  { %240 = shalt.err (!%p237_p7)
}
  0x11   :  { %s292_s19 = smov 128   ;;  %s293_s20 = smov 8  }
  0x12   :  { %21 = dma.hbm_to_vmem [thread:$0]  %s351_s0, 256, %s16_s10, [#allocation3], %s292_s19, %s292_s19, %s293_s20  }
  0x13   :  { %s294_s23 = smov [#allocation5]   ;;  %s241_s27 = scalar_lea.hbm %s352_s1, 256 }
  0x14   :  { %s27_s24 = sshll.u32 %s294_s23, 4  ;;  %p242_p8 = scmp.ne.s32.totalorder %s352_s1, %s241_s27  ;;  %s28_s24 = int_to_ptr.vmem [resolvable:$true] %s27_s24 }
  0x15   :  { %p245_p9 = scmp.lt.u32.totalorder %s241_s27, %s352_s1 }
  0x17   :  { %p247_p10 = pnand %p245_p9, %p242_p8 }
  0x19   :  { %250 = shalt.err (!%p247_p10)
}
  0x1a   :  { %s251_s4 = scalar_lea.vmem %s28_s24, 256  ;;  %p256_p12 = scmp.lt.s32.totalorder %s28_s24, %s28_s24 }
  0x1b   :  { %p252_p11 = scmp.ne.s32.totalorder %s28_s24, %s251_s4  ;;  %p257_p13 = scmp.lt.s32.totalorder %s251_s4, %s251_s4 }
  0x1d   :  { %p258_p0 = por %p257_p13, %p256_p12 }
  0x1f   :  { %p259_p1 = pnand %p258_p0, %p252_p11 }
  0x21   :  { %262 = shalt.err (!%p259_p1)
}
  0x22   :  { %33 = dma.hbm_to_vmem [thread:$0]  %s352_s1, 256, %s28_s24, [#allocation6], %s292_s19, %s292_s19, %s293_s20  }
  0x23   :  { %285 = dma.done.wait [#allocation3], 256  }
  0x24   :  { %286 = vsyncadd [#allocation3], 4294967040 }
  0x25   :  { %287 = dma.done.wait [#allocation6], 256  }
  0x26   :  { %288 = vsyncadd [#allocation6], 4294967040  ;;  %v295_v0 = vmov 12   ;;  %v296_v1 = vmov 13   ;;  %vm60_vm0 = vcmask 1043456   ;;  %vm55_vm1 = vcmask 97280  }
  0x27   :  { %212 = vset.pattern.permute.xlu0 %v295_v0  ;;  %213 = vset.pattern.permute.xlu1 %v296_v1  ;;  %vm297_vm2 = vmmov 1   ;;  %v43_v2 = vld [vmem:[#allocation2] sm:$0xff]  ;;  %v44_v3 = vld [vmem:[#allocation2 + $0x8] sm:$0xf]  ;;  %v40_v4 = vld [vmem:[#allocation5] sm:$0xff]  ;;  %v298_v8 = vmov 14  }
  0x28   :  { %vm198_vm3 = vmpackc.low %vm60_vm0, %vm297_vm2  ;;  %v197_v5 = vpack.c.bf16 %v44_v3, %v43_v2  ;;  %194 = vmatprep.mubr.msk.f32.mxu0 %vm55_vm1, %v40_v4  ;;  %v41_v6 = vld [vmem:[#allocation5 + $0x8] sm:$0x3]  ;;  %v42_v7 = vld [vmem:[#allocation5] sm:$0x1]  ;;  %vm151_vm4 = vcmask 1041408   ;;  %s299_s1 = smov [#allocation7]  }
  0x29   :  { %52 = vperm.xlu0 %212, %v41_v6   ;;  %146 = vperm.xlu1 %213, %v41_v6   ;;  %s173_s6 = sshll.u32 %s299_s1, 4  ;;  %s174_s6 = int_to_ptr.vmem [resolvable:$true] %s173_s6 }
  0x2a   :  { %199 = vmatprep.subr.msk.bf16.mxu0 %vm198_vm3, %v197_v5  ;;  %s263_s7 = scalar_lea.vmem %s174_s6, 16  ;;  %s267_s8 = scalar_lea.vmem %s174_s6, 32 }
  0x2b   :  { %202 = vmatpush3.bf16.msk.msra.mxu0 %vm198_vm3, %v197_v5  ;;  %p264_p2 = scmp.ne.s32.totalorder %s174_s6, %s263_s7  ;;  %p268_p3 = scmp.lt.s32.totalorder %s174_s6, %s174_s6 }
  0x2c   :  { %p269_p4 = scmp.lt.s32.totalorder %s267_s8, %s263_s7 }
  0x2d   :  { %47 = vperm.xlu0 %212, %v40_v4   ;;  %142 = vperm.xlu1 %213, %v40_v4  }
  0x2e   :  { %195 = vmatmul.mubr.msk.f32.vlgmr.msra.gmra.mrb[0].mxu0 %vm55_vm1, %v41_v6  ;;  %p270_p5 = por %p269_p4, %p268_p3 }
  0x30   :  { %p271_p6 = pnand %p270_p5, %p264_p2 }
  0x31   :  { %214 = vset.pattern.permute.xlu0 %v298_v8 }
  0x32   :  { %162 = vperm.xlu0 %214, %v42_v7  }
  0xa8   :  { %v53_v9 = vpop.permute.xlu0 %52  ;;  %v147_v15 = vpop.permute.xlu1 %146 }
  0xac   :  { %v48_v11 = vpop.permute.xlu0 %47  ;;  %v143_v19 = vpop.permute.xlu1 %142 }
  0xb1   :  { %v163_v28 = vpop.permute.xlu0 %162 }
 0x101   :  { %v196_v10 = vpop.f32.mrb[0].mxu0 }
 0x102   :  { %v136_v12 = vadd.f32 %v196_v10, %v53_v9  ;;  %v130_v13 = vpop.f32.mrb[1].mxu0 }
 0x103   :  { %v131_v14 = vadd.f32 %v130_v13, %v48_v11 }
 0x104   :  { %215 = vtanh.f32 %v136_v12 }
 0x105   :  { %217 = vtanh.f32 %v131_v14 }
 0x10e   :  { %v216_v16 = vpop.eup %215 }
 0x10f   :  { %v218_v17 = vpop.eup %217  ;;  %v150_v18 = vmul.f32 %v216_v16, %v147_v15 }
 0x110   :  { %v149_v20 = vmul.f32 %v218_v17, %v143_v19 }
 0x111   :  { %v152_v21 = vsel %vm151_vm4, %v150_v18, 0.0 }
 0x112   :  { %v153_v22 = vadd.f32 %v152_v21, %v149_v20 }
 0x114   :  { %v154_v23 = vrot.slane %v153_v22, 4 }
 0x116   :  { %v155_v24 = vadd.f32 %v154_v23, %v153_v22 }
 0x118   :  { %v156_v25 = vrot.slane %v155_v24, 2 }
 0x11a   :  { %v157_v26 = vadd.f32 %v156_v25, %v155_v24 }
 0x11c   :  { %v158_v27 = vrot.slane %v157_v26, 1 }
 0x11e   :  { %v159_v29 = vadd.f32 %v158_v27, %v157_v26 }
 0x120   :  { %v165_v30 = vadd.f32 %v163_v28, %v159_v29 }
 0x122   :  { %166 = vst [vmem:[#allocation7] sm:$0x1] %v165_v30 }
 0x123   :  { %274 = shalt.err (!%p271_p6)
}
 0x124   :  { %s275_s11 = scalar_lea.hbm %s353_s2, 16 }
 0x125   :  { %p276_p7 = scmp.ne.s32.totalorder %s353_s2, %s275_s11  ;;  %p279_p8 = scmp.lt.u32.totalorder %s275_s11, %s353_s2 }
 0x127   :  { %p281_p9 = pnand %p279_p8, %p276_p7 }
 0x129   :  { %284 = shalt.err (!%p281_p9)
}
 0x12a   :  { %176 = dma.vmem_to_hbm [thread:$0]  %s174_s6, 16, %s353_s2, [#allocation4]  }
 0x12b   :  { %289 = dma.done.wait [#allocation4], 16  }
 0x12c   :  { %290 = vsyncadd [#allocation4], 4294967280 }
 0x12d   :  { %180 = vsyncpa [#allocation3], 1 }
 0x12e   :  { %181 = vsyncpa [#allocation6], 1 }
 0x12f   :  { %182 = vsyncpa [#allocation4], 1 }

</bundles_post_ra>
